<compile_context>
chip_gen: v7x
topology: tpu7x:2x2x1
jax: 0.10.0
libtpu: 0.0.40
codegen_flags: <defaults>
</compile_context>

<pallas_src>
import functools

import jax
import jax.numpy as jnp
from jax.experimental import pallas as pl
from jax.experimental.pallas import tpu as pltpu

GAMMA_NEG = 4.0
GAMMA_POS = 1.0
CLIP = 0.05
EPS = 1e-8

# Explicit scoped-VMEM limit handed to Mosaic (48 MiB is safe on every
# generation and well above v5e's 16 MiB scoped default).
_VMEM_LIMIT_BYTES = 48 * 1024 * 1024
# Target total VMEM use when sizing tiles (leave headroom under the limit).
_VMEM_BUDGET_BYTES = 40 * 1024 * 1024
# Allowance for Mosaic-materialized full-tile f32 temporaries of the
# sigmoid/select/log/pow chain (~8 live f32 values per element).
_INTERMEDIATE_BYTES_PER_ELEM = 32
# Lane-dense width used when num_classes is not a multiple of 128.
_FLAT_LANES = 512


def _round_up(n, m):
    return ((n + m - 1) // m) * m


def _cdiv(a, b):
    return -(-a // b)


def _ipow(base, exponent: int):
    """base ** exponent for a static non-negative integer exponent (VPU only)."""
    if exponent == 0:
        return jnp.ones_like(base)
    result = None
    p = base
    e = exponent
    while e:
        if e & 1:
            result = p if result is None else result * p
        e >>= 1
        if e:
            p = p * p
    return result


def _asl_kernel(x_ref, y_ref, out_ref, *, gamma_neg, gamma_pos, clip, eps, binarized):
    x = x_ref[...].astype(jnp.float32)
    y = y_ref[...].astype(jnp.float32)

    xs_pos = jax.nn.sigmoid(x)
    xs_neg = 1.0 - xs_pos
    # Asymmetric clipping (probability shifting) on the negative side.
    if clip is not None and clip > 0:
        xs_neg = jnp.minimum(xs_neg + clip, 1.0)

    gp, gn = float(gamma_pos), float(gamma_neg)

    if binarized:
        # y is a 0/1 multi-label vector: the two BCE logs collapse into one
        # select-then-log and the focusing base into (1 - p).  This halves
        # the per-element log() count on the single EUP slot.
        is_pos = y > 0.0
        p = jnp.where(is_pos, xs_pos, xs_neg)
        loss = jnp.log(jnp.maximum(p, eps))
        if gn > 0 or gp > 0:
            base = 1.0 - p
            if gp.is_integer() and gn.is_integer() and gp >= 0 and gn >= 0:
                # Static-integer powers: pure VPU, no exp/log pair per element.
                w = jnp.where(is_pos, _ipow(base, int(gp)), _ipow(base, int(gn)))
            else:
                w = jnp.power(base, jnp.where(is_pos, gp, gn))
            loss = loss * w
    else:
        # General (soft-label) path, matches the reference formula exactly.
        anti = 1.0 - y
        loss = y * jnp.log(jnp.maximum(xs_pos, eps))
        loss = loss + anti * jnp.log(jnp.maximum(xs_neg, eps))
        if gn > 0 or gp > 0:
            base = 1.0 - xs_pos * y - xs_neg * anti
            w = jnp.power(base, gp * y + gn * anti)
            loss = loss * w

    # TODO(synk): if this kernel is ever differentiated and the PyTorch
    # disable_torch_grad_focal_loss=True behavior is wanted, wrap the focusing
    # weight `w` in jax.lax.stop_gradient (the forward value is identical).

    # One scalar partial per grid step; each step owns a distinct SMEM output
    # block, so this is safe under "parallel" grid semantics.
    out_ref[0, 0] = -jnp.sum(loss)


def asymmetric_loss(x, y, *, gamma_neg=GAMMA_NEG, gamma_pos=GAMMA_POS,
                    clip=CLIP, eps=EPS, tile_rows=None, assume_binarized=True):
    """Scalar float32 loss matching AsymmetricLossOptimized.forward.

    Requirements / options:
      * `assume_binarized=True` (default) requires y to contain only 0/1
        values (the documented contract of the PyTorch module).  Pass
        `assume_binarized=False` for soft labels; that uses the exact general
        formula (two logs + data-dependent pow).
      * The kernel upcasts to f32 internally, so callers may pass x as
        bfloat16 and y as int8/bfloat16 to halve HBM traffic (the dominant
        cost on v5e/v6e) without changing this function.
    """
    B, C = x.shape
    assert y.shape == (B, C), (x.shape, y.shape)

    # --- choose a lane-dense 2D view ---------------------------------------
    if C % 128 == 0:
        x2, y2 = x, y
        R, W = B, C
    else:
        # C like 80/1000 would waste lanes of every vreg and force masked
        # stores.  The loss is a global sum, so re-tile to (rows, 512); padded
        # elements use x=-100, y=0: sigmoid(-100)~0 -> xs_neg clamps to 1 ->
        # log(1)=0 and the focusing base is 0, i.e. exactly zero contribution.
        W = _FLAT_LANES
        n = B * C
        R = _cdiv(n, W)
        tail = R * W - n
        x2 = x.reshape(-1)
        y2 = y.reshape(-1)
        if tail:
            x2 = jnp.pad(x2, (0, tail), constant_values=-100.0)
            y2 = jnp.pad(y2, (0, tail), constant_values=0)
        x2 = x2.reshape(R, W)
        y2 = y2.reshape(R, W)

    # --- tile sizing --------------------------------------------------------
    x_bytes = jnp.dtype(x.dtype).itemsize
    y_bytes = jnp.dtype(y.dtype).itemsize
    # Sublane multiple for the narrowest input dtype (avoids packed-layout
    # relayouts when narrow inputs are upcast): f32 -> 8, bf16 -> 16, i8 -> 32.
    sub = {1: 32, 2: 16}.get(min(x_bytes, y_bytes), 8)

    if tile_rows is None:
        per_elem = 2 * (x_bytes + y_bytes) + _INTERMEDIATE_BYTES_PER_ELEM
        budget_elems = _VMEM_BUDGET_BYTES // per_elem
        tile_rows = max(sub, (budget_elems // W) // sub * sub)
    tile_rows = max(sub, (int(tile_rows) // sub) * sub)
    # Keep >= 2 tiles when the data allows it so both v7x TensorCores get work
    # under dimension_semantics=("parallel",); negligible cost on 1-TC chips.
    if _round_up(R, sub) >= 2 * sub:
        tile_rows = min(tile_rows, _round_up(_cdiv(R, 2), sub))
    tile_rows = min(tile_rows, _round_up(R, sub))
    # TODO(synk): for extremely large W (sub rows x W over the VMEM budget) add
    # a second "arbitrary" grid axis over W; not needed for realistic C.

    # Pad rows to a multiple of the tile (x=-100, y=0 -> zero contribution).
    R_pad = _round_up(R, tile_rows)
    if R_pad != R:
        x2 = jnp.pad(x2, ((0, R_pad - R), (0, 0)), constant_values=-100.0)
        y2 = jnp.pad(y2, ((0, R_pad - R), (0, 0)), constant_values=0)
    num_tiles = R_pad // tile_rows

    kernel = functools.partial(
        _asl_kernel, gamma_neg=gamma_neg, gamma_pos=gamma_pos, clip=clip,
        eps=eps, binarized=assume_binarized,
    )

    partials = pl.pallas_call(
        kernel,
        out_shape=jax.ShapeDtypeStruct((num_tiles, 1), jnp.float32),
        grid_spec=pltpu.PrefetchScalarGridSpec(
            num_scalar_prefetch=0,
            grid=(num_tiles,),
            in_specs=[
                pl.BlockSpec((tile_rows, W), lambda i: (i, 0)),
                pl.BlockSpec((tile_rows, W), lambda i: (i, 0)),
            ],
            out_specs=pl.BlockSpec(
                (1, 1), lambda i: (i, 0), memory_space=pltpu.SMEM
            ),
        ),
        compiler_params=pltpu.CompilerParams(
            # Independent per-tile partials -> shardable across TensorCores
            # (v7x megacore); near-zero effect on single-TC v5e/v6e.
            dimension_semantics=("parallel",),
            vmem_limit_bytes=_VMEM_LIMIT_BYTES,
        ),
    )(x2, y2)

    return jnp.sum(partials)


def _reference(x, y, gamma_neg=GAMMA_NEG, gamma_pos=GAMMA_POS, clip=CLIP, eps=EPS):
    anti = 1.0 - y
    xs_pos = jax.nn.sigmoid(x)
    xs_neg = jnp.minimum(1.0 - xs_pos + clip, 1.0)
    loss = y * jnp.log(jnp.maximum(xs_pos, eps)) + anti * jnp.log(
        jnp.maximum(xs_neg, eps)
    )
    w = jnp.power(1.0 - xs_pos * y - xs_neg * anti, gamma_pos * y + gamma_neg * anti)
    return -jnp.sum(loss * w)


if __name__ == "__main__":
    # Case 1: COCO-like multi-label problem, C=80 (not a multiple of 128) ->
    # exercises the lane-dense flatten path plus element/row padding.
    kx, ky = jax.random.split(jax.random.PRNGKey(0))
    B, C = 44, 80
    x = jax.random.normal(kx, (B, C), dtype=jnp.float32)
    y = (jax.random.uniform(ky, (B, C)) > 0.8).astype(jnp.float32)  # binarized
    loss = jax.block_until_ready(asymmetric_loss(x, y))
    ref = _reference(x, y)
    assert jnp.allclose(loss, ref, rtol=1e-4, atol=1e-4), (loss, ref)

    # Case 2: C multiple of 128 -> direct batch-tiled path; a small explicit
    # tile forces multiple "parallel" grid tiles plus batch padding (100->128).
    kx2, ky2 = jax.random.split(jax.random.PRNGKey(1))
    B2, C2 = 100, 256
    x2 = jax.random.normal(kx2, (B2, C2), dtype=jnp.float32)
    y2 = (jax.random.uniform(ky2, (B2, C2)) > 0.7).astype(jnp.float32)
    loss2 = jax.block_until_ready(asymmetric_loss(x2, y2, tile_rows=32))
    ref2 = _reference(x2, y2)
    assert jnp.allclose(loss2, ref2, rtol=1e-4, atol=1e-4), (loss2, ref2)

    print("KERNEL_OK")
</pallas_src>

<mosaic_0001>
module attributes {stable_mosaic.version = 11 : i64} {
  func.func @_asl_kernel(%arg0: i32, %arg1: memref<8x512xf32, #tpu.memory_space<vmem>>, %arg2: memref<8x512xf32, #tpu.memory_space<vmem>>, %arg3: memref<1x1xf32, #tpu.memory_space<smem>>) attributes {dimension_semantics = [#tpu.dimension_semantics<parallel>], iteration_bounds = array<i64: 1>, scalar_prefetch = 0 : i64, scratch_operands = 0 : i64, tpu.core_type = #tpu.core_type<tc>, window_params = [{transform_indices = @transform_0, window_bounds = array<i64: 8, 512>}, {transform_indices = @transform_1, window_bounds = array<i64: 8, 512>}, {transform_indices = @transform_2, window_bounds = array<i64: 1, 1>}]} {
    %c0 = arith.constant 0 : index
    %c0_0 = arith.constant 0 : index
    %0 = vector.load %arg1[%c0, %c0_0] : memref<8x512xf32, #tpu.memory_space<vmem>>, vector<8x512xf32>
    %c0_1 = arith.constant 0 : index
    %c0_2 = arith.constant 0 : index
    %1 = vector.load %arg2[%c0_1, %c0_2] : memref<8x512xf32, #tpu.memory_space<vmem>>, vector<8x512xf32>
    %2 = arith.negf %0 : vector<8x512xf32>
    %3 = math.exp %2 : vector<8x512xf32>
    %cst = arith.constant 1.000000e+00 : f32
    %4 = vector.broadcast %cst : f32 to vector<8x512xf32>
    %5 = arith.addf %4, %3 : vector<8x512xf32>
    %6 = arith.divf %4, %5 : vector<8x512xf32>
    %cst_3 = arith.constant 1.000000e+00 : f32
    %7 = vector.broadcast %cst_3 : f32 to vector<8x512xf32>
    %8 = arith.subf %7, %6 : vector<8x512xf32>
    %cst_4 = arith.constant 5.000000e-02 : f32
    %9 = vector.broadcast %cst_4 : f32 to vector<8x512xf32>
    %10 = arith.addf %8, %9 : vector<8x512xf32>
    %cst_5 = arith.constant 1.000000e+00 : f32
    %11 = vector.broadcast %cst_5 : f32 to vector<8x512xf32>
    %12 = arith.minimumf %10, %11 : vector<8x512xf32>
    %cst_6 = arith.constant 0.000000e+00 : f32
    %13 = vector.broadcast %cst_6 : f32 to vector<8x512xf32>
    %14 = arith.cmpf ogt, %1, %13 : vector<8x512xf32>
    %15 = arith.select %14, %6, %12 : vector<8x512xi1>, vector<8x512xf32>
    %cst_7 = arith.constant 9.99999993E-9 : f32
    %16 = vector.broadcast %cst_7 : f32 to vector<8x512xf32>
    %17 = arith.maximumf %15, %16 : vector<8x512xf32>
    %18 = math.log %17 : vector<8x512xf32>
    %cst_8 = arith.constant 1.000000e+00 : f32
    %19 = vector.broadcast %cst_8 : f32 to vector<8x512xf32>
    %20 = arith.subf %19, %15 : vector<8x512xf32>
    %21 = arith.mulf %20, %20 : vector<8x512xf32>
    %22 = arith.mulf %21, %21 : vector<8x512xf32>
    %23 = arith.select %14, %20, %22 : vector<8x512xi1>, vector<8x512xf32>
    %24 = arith.mulf %18, %23 : vector<8x512xf32>
    %25 = vector.shape_cast %24 : vector<8x512xf32> to vector<1x8x512xf32>
    %cst_9 = arith.constant dense<0.000000e+00> : vector<1xf32>
    %26 = vector.multi_reduction <add>, %25, %cst_9 [1, 2] : vector<1x8x512xf32> to vector<1xf32>
    %27 = vector.shape_cast %26 : vector<1xf32> to vector<1x1x1xf32>
    %28 = vector.extract %27[0, 0, 0] : f32 from vector<1x1x1xf32>
    %cst_10 = arith.constant 0.000000e+00 : f32
    %29 = arith.subf %cst_10, %28 : f32
    %c0_11 = arith.constant 0 : index
    %c0_12 = arith.constant 0 : index
    %30 = memref.load %arg3[%c0_11, %c0_12] : memref<1x1xf32, #tpu.memory_space<smem>>
    memref.store %29, %arg3[%c0_11, %c0_12] : memref<1x1xf32, #tpu.memory_space<smem>>
    return
  }
  func.func @transform_0(%arg0: i32) -> (i32, i32) {
    %c0_i32 = arith.constant 0 : i32
    %c0_i32_0 = arith.constant 0 : i32
    return %arg0, %c0_i32 : i32, i32
  }
  func.func @transform_1(%arg0: i32) -> (i32, i32) {
    %c0_i32 = arith.constant 0 : i32
    %c0_i32_0 = arith.constant 0 : i32
    return %arg0, %c0_i32 : i32, i32
  }
  func.func @transform_2(%arg0: i32) -> (i32, i32) {
    %c0_i32 = arith.constant 0 : i32
    %c0_i32_0 = arith.constant 0 : i32
    return %arg0, %c0_i32 : i32, i32
  }
}

</mosaic_0001>

<bundles_post_ra>
// kernel: tpu_custom_call.1
= control target key start
LH: loop header
LB: loop body
LE: loop exit
PB: predicated region body
PF: predicated region fallthrough
CT: control target
= control target key end

     0   :  { %7 = vsyncpa [#allocation3], 0  ;;  %s305_s0 = inlined_call_operand.hbm [shape: f32[8,512], index: 0, kind: input, shape index: {}]   ;;  %s306_s1 = inlined_call_operand.hbm [shape: f32[8,512], index: 1, kind: input, shape index: {}]   ;;  %s307_s2 = inlined_call_operand.hbm [shape: f32[1,1], index: 2, kind: output, shape index: {}]  }
   0x1   :  { %8 = vsyncpa [#allocation6], 0 }
   0x2   :  { %9 = vsyncpa [#allocation4], 0  ;;  %s243_s9 = smov [#allocation2]   ;;  %s244_s11 = smov [#allocation5]  }
   0x3   :  { %s16_s10 = sshll.u32 %s243_s9, 4  ;;  %s26_s12 = sshll.u32 %s244_s11, 4  ;;  %s17_s10 = int_to_ptr.vmem [resolvable:$true] %s16_s10  ;;  %s27_s12 = int_to_ptr.vmem [resolvable:$true] %s26_s12 }
   0x4   :  { %s183_s15 = scalar_lea.hbm %s305_s0, 512 }
   0x5   :  { %p184_p0 = scmp.ne.s32.totalorder %s305_s0, %s183_s15  ;;  %p187_p1 = scmp.lt.u32.totalorder %s183_s15, %s305_s0 }
   0x7   :  { %p189_p2 = pnand %p187_p1, %p184_p0 }
   0x9   :  { %192 = shalt.err (!%p189_p2)
}
   0xa   :  { %s193_s20 = scalar_lea.vmem %s17_s10, 512  ;;  %p198_p4 = scmp.lt.s32.totalorder %s17_s10, %s17_s10 }
   0xb   :  { %p194_p3 = scmp.ne.s32.totalorder %s17_s10, %s193_s20  ;;  %p199_p5 = scmp.lt.s32.totalorder %s193_s20, %s193_s20 }
   0xd   :  { %p200_p6 = por %p199_p5, %p198_p4 }
   0xf   :  { %p201_p7 = pnand %p200_p6, %p194_p3 }
  0x11   :  { %204 = shalt.err (!%p201_p7)
}
  0x12   :  { %19 = dma.hbm_to_vmem [thread:$0]  %s305_s0, 512, %s17_s10, [#allocation3]  }
  0x13   :  { %s205_s25 = scalar_lea.hbm %s306_s1, 512 }
  0x14   :  { %p206_p8 = scmp.ne.s32.totalorder %s306_s1, %s205_s25  ;;  %p209_p9 = scmp.lt.u32.totalorder %s205_s25, %s306_s1 }
  0x16   :  { %p211_p10 = pnand %p209_p9, %p206_p8 }
  0x18   :  { %214 = shalt.err (!%p211_p10)
}
  0x19   :  { %s215_s30 = scalar_lea.vmem %s27_s12, 512  ;;  %p220_p12 = scmp.lt.s32.totalorder %s27_s12, %s27_s12 }
  0x1a   :  { %p216_p11 = scmp.ne.s32.totalorder %s27_s12, %s215_s30  ;;  %p221_p13 = scmp.lt.s32.totalorder %s215_s30, %s215_s30 }
  0x1c   :  { %p222_p0 = por %p221_p13, %p220_p12 }
  0x1e   :  { %p223_p1 = pnand %p222_p0, %p216_p11 }
  0x20   :  { %226 = shalt.err (!%p223_p1)
}
  0x21   :  { %29 = dma.hbm_to_vmem [thread:$0]  %s306_s1, 512, %s27_s12, [#allocation6]  }
  0x22   :  { %237 = dma.done.wait [#allocation3], 512  }
  0x23   :  { %238 = vsyncadd [#allocation3], 4294966784 }
  0x24   :  { %239 = dma.done.wait [#allocation6], 512  }
  0x25   :  { %240 = vsyncadd [#allocation6], 4294966784  ;;  %v36_v0 = vld [vmem:[#allocation2] sm:$0xff]  ;;  %v37_v1 = vld [vmem:[#allocation2 + $0x8] sm:$0xff]  ;;  %s227_s7 = scalar_lea.hbm %s307_s2, 16 }
  0x26   :  { %v38_v2 = vld [vmem:[#allocation2 + $0x10] sm:$0xff]  ;;  %v39_v3 = vld [vmem:[#allocation2 + $0x18] sm:$0xff]  ;;  %v150_v4 = vmul.f32 -1.442695, %v36_v0  ;;  %v151_v5 = vmul.f32 -1.442695, %v37_v1  ;;  %p228_p2 = scmp.ne.s32.totalorder %s307_s2, %s227_s7  ;;  %p231_p3 = scmp.lt.u32.totalorder %s227_s7, %s307_s2 }
  0x27   :  { %v152_v6 = vmul.f32 -1.442695, %v38_v2  ;;  %v153_v7 = vmul.f32 -1.442695, %v39_v3  ;;  %v40_v18 = vld [vmem:[#allocation5] sm:$0xff]  ;;  %v41_v21 = vld [vmem:[#allocation5 + $0x8] sm:$0xff] }
  0x28   :  { %159 = vpow2.f32 %v150_v4  ;;  %v42_v24 = vld [vmem:[#allocation5 + $0x10] sm:$0xff]  ;;  %v43_v27 = vld [vmem:[#allocation5 + $0x18] sm:$0xff]  ;;  %vm80_vm0 = vcmp.gt.f32.partialorder %v40_v18, 0.0  ;;  %vm81_vm1 = vcmp.gt.f32.partialorder %v41_v21, 0.0  ;;  %p233_p4 = pnand %p231_p3, %p228_p2 }
  0x29   :  { %161 = vpow2.f32 %v151_v5  ;;  %vm82_vm2 = vcmp.gt.f32.partialorder %v42_v24, 0.0  ;;  %vm83_vm3 = vcmp.gt.f32.partialorder %v43_v27, 0.0 }
  0x2a   :  { %163 = vpow2.f32 %v152_v6 }
  0x2b   :  { %165 = vpow2.f32 %v153_v7 }
  0x32   :  { %v160_v8 = vpop.eup %159 }
  0x33   :  { %v162_v9 = vpop.eup %161  ;;  %v56_v10 = vadd.f32 1.0, %v160_v8 }
  0x34   :  { %v164_v11 = vpop.eup %163  ;;  %v57_v12 = vadd.f32 1.0, %v162_v9 }
  0x35   :  { %v166_v13 = vpop.eup %165  ;;  %v58_v14 = vadd.f32 1.0, %v164_v11  ;;  %167 = vrcp.f32 %v56_v10 }
  0x36   :  { %v59_v15 = vadd.f32 1.0, %v166_v13  ;;  %169 = vrcp.f32 %v57_v12 }
  0x37   :  { %171 = vrcp.f32 %v58_v14 }
  0x38   :  { %173 = vrcp.f32 %v59_v15 }
  0x3f   :  { %v168_v16 = vpop.eup %167 }
  0x40   :  { %v170_v17 = vpop.eup %169  ;;  %v68_v19 = vsub.f32 1.0, %v168_v16 }
  0x41   :  { %v172_v20 = vpop.eup %171  ;;  %v69_v22 = vsub.f32 1.0, %v170_v17 }
  0x42   :  { %v174_v23 = vpop.eup %173  ;;  %v70_v25 = vsub.f32 1.0, %v172_v20  ;;  %v72_v26 = vadd.f32 0.05, %v68_v19 }
  0x43   :  { %v71_v28 = vsub.f32 1.0, %v174_v23  ;;  %v73_v29 = vadd.f32 0.05, %v69_v22 }
  0x44   :  { %v74_v30 = vadd.f32 0.05, %v70_v25  ;;  %v76_v31 = vmin.f32 %v72_v26, 1.0 }
  0x45   :  { %v75_v32 = vadd.f32 0.05, %v71_v28  ;;  %v77_v33 = vmin.f32 %v73_v29, 1.0 }
  0x46   :  { %v78_v34 = vmin.f32 %v74_v30, 1.0  ;;  %v84_v35 = vsel %vm80_vm0, %v168_v16, %v76_v31 }
  0x47   :  { %v79_v36 = vmin.f32 %v75_v32, 1.0  ;;  %v85_v37 = vsel %vm81_vm1, %v170_v17, %v77_v33  ;;  %v88_v38 = vmax.f32 %v84_v35, 1e-08  ;;  %v100_v39 = vsub.f32 1.0, %v84_v35 }
  0x48   :  { %v86_v40 = vsel %vm82_vm2, %v172_v20, %v78_v34  ;;  %v89_v41 = vmax.f32 %v85_v37, 1e-08  ;;  %v101_v42 = vsub.f32 1.0, %v85_v37 }
  0x49   :  { %v87_v43 = vsel %vm83_vm3, %v174_v23, %v79_v36  ;;  %v90_v44 = vmax.f32 %v86_v40, 1e-08  ;;  %175 = vlog2.f32 %v88_v38  ;;  %v102_v45 = vsub.f32 1.0, %v86_v40 }
  0x4a   :  { %v91_v46 = vmax.f32 %v87_v43, 1e-08  ;;  %177 = vlog2.f32 %v89_v41  ;;  %v103_v47 = vsub.f32 1.0, %v87_v43  ;;  %v104_v48 = vmul.f32 %v100_v39, %v100_v39 }
  0x4b   :  { %179 = vlog2.f32 %v90_v44  ;;  %v105_v49 = vmul.f32 %v101_v42, %v101_v42  ;;  %v106_v50 = vmul.f32 %v102_v45, %v102_v45 }
  0x4c   :  { %181 = vlog2.f32 %v91_v46  ;;  %v107_v51 = vmul.f32 %v103_v47, %v103_v47  ;;  %v108_v52 = vmul.f32 %v104_v48, %v104_v48 }
  0x4d   :  { %v109_v53 = vmul.f32 %v105_v49, %v105_v49  ;;  %v110_v54 = vmul.f32 %v106_v50, %v106_v50 }
  0x4e   :  { %v111_v55 = vmul.f32 %v107_v51, %v107_v51  ;;  %v112_v57 = vsel %vm80_vm0, %v100_v39, %v108_v52 }
  0x4f   :  { %v113_v60 = vsel %vm81_vm1, %v101_v42, %v109_v53  ;;  %v114_v63 = vsel %vm82_vm2, %v102_v45, %v110_v54 }
  0x50   :  { %v115_v2 = vsel %vm83_vm3, %v103_v47, %v111_v55 }
  0x53   :  { %v176_v56 = vpop.eup %175 }
  0x54   :  { %v178_v58 = vpop.eup %177  ;;  %v93_v59 = vmul.f32 0.6931472, %v176_v56 }
  0x55   :  { %v180_v61 = vpop.eup %179  ;;  %v95_v62 = vmul.f32 0.6931472, %v178_v58 }
  0x56   :  { %v182_v0 = vpop.eup %181  ;;  %v97_v1 = vmul.f32 0.6931472, %v180_v61  ;;  %v116_v3 = vmul.f32 %v112_v57, %v93_v59 }
  0x57   :  { %v99_v4 = vmul.f32 0.6931472, %v182_v0  ;;  %v117_v5 = vmul.f32 %v113_v60, %v95_v62 }
  0x58   :  { %v118_v6 = vmul.f32 %v114_v63, %v97_v1 }
  0x59   :  { %v119_v7 = vmul.f32 %v115_v2, %v99_v4  ;;  %v120_v8 = vadd.f32 %v117_v5, %v116_v3 }
  0x5b   :  { %v121_v9 = vadd.f32 %v120_v8, %v118_v6 }
  0x5d   :  { %v122_v10 = vadd.f32 %v121_v9, %v119_v7 }
  0x5f   :  { %123 = vadd.xlane.f32.xlu0 %v122_v10 }
  0xec   :  { %v124_v11 = vpop.xlane.xlu0 %123 }
  0xed   :  { %v125_v12 = vrot.slane %v124_v11, 4 }
  0xef   :  { %v126_v13 = vadd.f32 %v125_v12, %v124_v11 }
  0xf1   :  { %v127_v14 = vrot.slane %v126_v13, 2 }
  0xf3   :  { %v128_v15 = vadd.f32 %v127_v14, %v126_v13 }
  0xf5   :  { %v129_v16 = vrot.slane %v128_v15, 1 }
  0xf7   :  { %v130_v17 = vadd.f32 %v129_v16, %v128_v15 }
  0xf9   :  { %154 = vpush %v130_v17 }
 0x12a   :  { %s155_s1 = spop %154 }
 0x12b   :  { %s132_s4 = ssub.f32 0.0, %s155_s1 }
 0x12d   :  { %134 = sst [smem:[#allocation7]] %s132_s4 }
 0x12e   :  { %236 = shalt.err (!%p233_p4)
}
 0x12f   :  { %s245_s12 = smov [#allocation7]  }
 0x130   :  { %142 = dma.smem_to_hbm %s245_s12, 16, %s307_s2, [#allocation4]  }
 0x131   :  { %241 = dma.done.wait [#allocation4], 16  }
 0x132   :  { %242 = vsyncadd [#allocation4], 4294967280 }
 0x133   :  { %146 = sfence }
 0x134   :  { %147 = vsyncpa [#allocation3], 1 }
 0x135   :  { %148 = vsyncpa [#allocation6], 1 }
 0x136   :  { %149 = vsyncpa [#allocation4], 1 }

</bundles_post_ra>
